<compile_context>
chip_gen: v7x
topology: tpu7x:2x2x1
jax: 0.10.0
libtpu: 0.0.40
codegen_flags: <defaults>
</compile_context>

<pallas_src>
import functools
import math

import jax
import jax.numpy as jnp
from jax.experimental import pallas as pl
from jax.experimental.pallas import tpu as pltpu

LANE = 128      # lane width (last dim)
SUBLANE = 8     # sublane width (second-to-last dim)
BN_EPS = 1e-5


def _round_up(x, m):
    return (x + m - 1) // m * m


# ---------------------------------------------------------------------------
# Fused MLP kernel
# ---------------------------------------------------------------------------

def _mlp_kernel(num_layers, x_ref, hw_ref, hb_ref, hs_ref, hsh_ref,
                lw_ref, lb_ref, o_ref):
    """Fully fused eval-mode MLP forward.

      x_ref  : [Bp, F]     activations (batch padded to sublanes, features to lanes)
      hw_ref : [L, F, F]   hidden weights, pre-transposed to [in, out], zero-padded
      hb_ref : [L, 1, F]   hidden biases
      hs_ref : [L, 1, F]   folded BN scale  = gamma * rsqrt(running_var + eps)
      hsh_ref: [L, 1, F]   folded BN shift  = beta - running_mean * scale
      lw_ref : [F, F]      final weight (pre-transposed, zero-padded)
      lb_ref : [1, F]      final bias
      o_ref  : [Bp, F]     output (caller slices the real out_size)
    """
    h = x_ref[...]
    # Static unrolled loop: num_layers is tiny; gives the scheduler full visibility.
    for i in range(num_layers):
        z = jnp.dot(h, hw_ref[i], preferred_element_type=jnp.float32) + hb_ref[i]
        e = jnp.where(z > 0, z, jnp.exp(z) - 1.0)        # ELU(alpha=1)
        h = e * hs_ref[i] + hsh_ref[i]                   # folded eval-mode BatchNorm1d
        # Dropout(p=0.5) is identity in eval mode.
    o_ref[...] = (jnp.dot(h, lw_ref[...], preferred_element_type=jnp.float32)
                  + lb_ref[...])


# ---------------------------------------------------------------------------
# Parameter init (matches torch: bias=0, xavier_normal_ with gain=calculate_gain('relu'))
# ---------------------------------------------------------------------------

def init_params(key, in_size, out_size, num_layers, hidden_size):
    gain = math.sqrt(2.0)  # nn.init.calculate_gain('relu')
    hidden = []
    nin = in_size
    for _ in range(num_layers):
        key, wk = jax.random.split(key)
        std = gain * math.sqrt(2.0 / (nin + hidden_size))
        w = std * jax.random.normal(wk, (hidden_size, nin), dtype=jnp.float32)
        hidden.append(dict(
            w=w,
            b=jnp.zeros((hidden_size,), jnp.float32),
            gamma=jnp.ones((hidden_size,), jnp.float32),
            beta=jnp.zeros((hidden_size,), jnp.float32),
            rmean=jnp.zeros((hidden_size,), jnp.float32),
            rvar=jnp.ones((hidden_size,), jnp.float32),
        ))
        nin = hidden_size
    key, wk = jax.random.split(key)
    std = gain * math.sqrt(2.0 / (nin + out_size))
    w_last = std * jax.random.normal(wk, (out_size, nin), dtype=jnp.float32)
    b_last = jnp.zeros((out_size,), jnp.float32)
    return hidden, (w_last, b_last)


def pack_params(hidden_raw, last_raw, in_size, hidden_size, out_size):
    """One-time layout work: transpose, fold BN, pad to lane width, stack layers."""
    F = _round_up(max(in_size, hidden_size, out_size), LANE)
    L = len(hidden_raw)
    hw = jnp.zeros((L, F, F), jnp.float32)
    hb = jnp.zeros((L, 1, F), jnp.float32)
    hs = jnp.zeros((L, 1, F), jnp.float32)    # padded features: scale=0, shift=0
    hsh = jnp.zeros((L, 1, F), jnp.float32)   #   -> padded lanes stay exactly 0
    for i, p in enumerate(hidden_raw):
        wt = p["w"].T                                       # [in, hidden]
        scale = p["gamma"] * jax.lax.rsqrt(p["rvar"] + BN_EPS)
        shift = p["beta"] - p["rmean"] * scale
        hw = hw.at[i, :wt.shape[0], :wt.shape[1]].set(wt)
        hb = hb.at[i, 0, :hidden_size].set(p["b"])
        hs = hs.at[i, 0, :hidden_size].set(scale)
        hsh = hsh.at[i, 0, :hidden_size].set(shift)
    w_last, b_last = last_raw
    lw = jnp.zeros((F, F), jnp.float32).at[:w_last.shape[1], :w_last.shape[0]].set(w_last.T)
    lb = jnp.zeros((1, F), jnp.float32).at[0, :out_size].set(b_last)
    return dict(hw=hw, hb=hb, hs=hs, hsh=hsh, lw=lw, lb=lb)


# ---------------------------------------------------------------------------
# Forward: single pallas_call, whole-array VMEM blocks (everything is tiny)
# ---------------------------------------------------------------------------

@functools.partial(jax.jit, static_argnames=("num_layers", "out_size"))
def mlp_forward(x, packed, num_layers, out_size):
    B, Din = x.shape
    F = packed["lw"].shape[0]
    Bp = _round_up(B, SUBLANE)
    xp = jnp.zeros((Bp, F), jnp.float32).at[:B, :Din].set(x.astype(jnp.float32))

    vmem = pl.BlockSpec(memory_space=pltpu.MemorySpace.VMEM)
    out = pl.pallas_call(
        functools.partial(_mlp_kernel, num_layers),
        out_shape=jax.ShapeDtypeStruct((Bp, F), jnp.float32),
        in_specs=[vmem] * 7,
        out_specs=vmem,
    )(xp, packed["hw"], packed["hb"], packed["hs"], packed["hsh"],
      packed["lw"], packed["lb"])
    return out[:B, :out_size]


# ---------------------------------------------------------------------------
# Main
# ---------------------------------------------------------------------------

if __name__ == "__main__":
    batch, in_size, hidden_size, out_size, num_layers = 8, 16, 32, 8, 3

    key = jax.random.PRNGKey(0)
    key, xkey = jax.random.split(key)
    x = jax.random.normal(xkey, (batch, in_size), dtype=jnp.float32)

    hidden_raw, last_raw = init_params(key, in_size, out_size, num_layers, hidden_size)
    packed = pack_params(hidden_raw, last_raw, in_size, hidden_size, out_size)

    out = mlp_forward(x, packed, num_layers, out_size)
    out = jax.block_until_ready(out)

    # Pure-JAX reference (same eval-mode math, unpadded params) must match.
    h_ref = x
    for p in hidden_raw:
        z = h_ref @ p["w"].T + p["b"]
        e = jnp.where(z > 0, z, jnp.exp(z) - 1.0)
        h_ref = p["gamma"] * (e - p["rmean"]) / jnp.sqrt(p["rvar"] + BN_EPS) + p["beta"]
    ref = h_ref @ last_raw[0].T + last_raw[1]

    assert out.shape == (batch, out_size)
    assert jnp.allclose(out, ref, atol=1e-4, rtol=1e-4)

    print("KERNEL_OK")
</pallas_src>

<mosaic_0001>
module attributes {stable_mosaic.version = 11 : i64} {
  func.func @_mlp_kernel(%arg0: memref<8x128xf32, #tpu.memory_space<vmem>>, %arg1: memref<3x128x128xf32, #tpu.memory_space<vmem>>, %arg2: memref<3x1x128xf32, #tpu.memory_space<vmem>>, %arg3: memref<3x1x128xf32, #tpu.memory_space<vmem>>, %arg4: memref<3x1x128xf32, #tpu.memory_space<vmem>>, %arg5: memref<128x128xf32, #tpu.memory_space<vmem>>, %arg6: memref<1x128xf32, #tpu.memory_space<vmem>>, %arg7: memref<8x128xf32, #tpu.memory_space<vmem>>) attributes {dimension_semantics = [], scalar_prefetch = 0 : i64, scratch_operands = 0 : i64, tpu.core_type = #tpu.core_type<tc>} {
    %c0 = arith.constant 0 : index
    %c0_0 = arith.constant 0 : index
    %0 = vector.load %arg0[%c0, %c0_0] : memref<8x128xf32, #tpu.memory_space<vmem>>, vector<8x128xf32>
    %c0_1 = arith.constant 0 : index
    %c0_2 = arith.constant 0 : index
    %c0_3 = arith.constant 0 : index
    %1 = vector.load %arg1[%c0_1, %c0_2, %c0_3] : memref<3x128x128xf32, #tpu.memory_space<vmem>>, vector<1x128x128xf32>
    %2 = vector.shape_cast %1 : vector<1x128x128xf32> to vector<128x128xf32>
    %cst = arith.constant dense<0.000000e+00> : vector<8x128xf32>
    %3 = tpu.matmul %0, %2, %cst {dimension_numbers = #tpu.dot_dimension_numbers<[1], [0], [0], [1], [0, 0, 1, 1], [], []>} : vector<8x128xf32>, vector<128x128xf32>, vector<8x128xf32> -> vector<8x128xf32>
    %c0_4 = arith.constant 0 : index
    %c0_5 = arith.constant 0 : index
    %c0_6 = arith.constant 0 : index
    %4 = vector.load %arg2[%c0_4, %c0_5, %c0_6] : memref<3x1x128xf32, #tpu.memory_space<vmem>>, vector<1x1x128xf32>
    %5 = vector.shape_cast %4 : vector<1x1x128xf32> to vector<1x128xf32>
    %6 = vector.broadcast %5 : vector<1x128xf32> to vector<8x128xf32>
    %7 = arith.addf %3, %6 : vector<8x128xf32>
    %cst_7 = arith.constant 0.000000e+00 : f32
    %8 = vector.broadcast %cst_7 : f32 to vector<8x128xf32>
    %9 = arith.cmpf ogt, %7, %8 : vector<8x128xf32>
    %10 = math.exp %7 : vector<8x128xf32>
    %cst_8 = arith.constant 1.000000e+00 : f32
    %11 = vector.broadcast %cst_8 : f32 to vector<8x128xf32>
    %12 = arith.subf %10, %11 : vector<8x128xf32>
    %13 = arith.select %9, %7, %12 : vector<8x128xi1>, vector<8x128xf32>
    %c0_9 = arith.constant 0 : index
    %c0_10 = arith.constant 0 : index
    %c0_11 = arith.constant 0 : index
    %14 = vector.load %arg3[%c0_9, %c0_10, %c0_11] : memref<3x1x128xf32, #tpu.memory_space<vmem>>, vector<1x1x128xf32>
    %15 = vector.shape_cast %14 : vector<1x1x128xf32> to vector<1x128xf32>
    %16 = vector.broadcast %15 : vector<1x128xf32> to vector<8x128xf32>
    %17 = arith.mulf %13, %16 : vector<8x128xf32>
    %c0_12 = arith.constant 0 : index
    %c0_13 = arith.constant 0 : index
    %c0_14 = arith.constant 0 : index
    %18 = vector.load %arg4[%c0_12, %c0_13, %c0_14] : memref<3x1x128xf32, #tpu.memory_space<vmem>>, vector<1x1x128xf32>
    %19 = vector.shape_cast %18 : vector<1x1x128xf32> to vector<1x128xf32>
    %20 = vector.broadcast %19 : vector<1x128xf32> to vector<8x128xf32>
    %21 = arith.addf %17, %20 : vector<8x128xf32>
    %c1 = arith.constant 1 : index
    %c0_15 = arith.constant 0 : index
    %c0_16 = arith.constant 0 : index
    %22 = vector.load %arg1[%c1, %c0_15, %c0_16] : memref<3x128x128xf32, #tpu.memory_space<vmem>>, vector<1x128x128xf32>
    %23 = vector.shape_cast %22 : vector<1x128x128xf32> to vector<128x128xf32>
    %cst_17 = arith.constant dense<0.000000e+00> : vector<8x128xf32>
    %24 = tpu.matmul %21, %23, %cst_17 {dimension_numbers = #tpu.dot_dimension_numbers<[1], [0], [0], [1], [0, 0, 1, 1], [], []>} : vector<8x128xf32>, vector<128x128xf32>, vector<8x128xf32> -> vector<8x128xf32>
    %c1_18 = arith.constant 1 : index
    %c0_19 = arith.constant 0 : index
    %c0_20 = arith.constant 0 : index
    %25 = vector.load %arg2[%c1_18, %c0_19, %c0_20] : memref<3x1x128xf32, #tpu.memory_space<vmem>>, vector<1x1x128xf32>
    %26 = vector.shape_cast %25 : vector<1x1x128xf32> to vector<1x128xf32>
    %27 = vector.broadcast %26 : vector<1x128xf32> to vector<8x128xf32>
    %28 = arith.addf %24, %27 : vector<8x128xf32>
    %cst_21 = arith.constant 0.000000e+00 : f32
    %29 = vector.broadcast %cst_21 : f32 to vector<8x128xf32>
    %30 = arith.cmpf ogt, %28, %29 : vector<8x128xf32>
    %31 = math.exp %28 : vector<8x128xf32>
    %cst_22 = arith.constant 1.000000e+00 : f32
    %32 = vector.broadcast %cst_22 : f32 to vector<8x128xf32>
    %33 = arith.subf %31, %32 : vector<8x128xf32>
    %34 = arith.select %30, %28, %33 : vector<8x128xi1>, vector<8x128xf32>
    %c1_23 = arith.constant 1 : index
    %c0_24 = arith.constant 0 : index
    %c0_25 = arith.constant 0 : index
    %35 = vector.load %arg3[%c1_23, %c0_24, %c0_25] : memref<3x1x128xf32, #tpu.memory_space<vmem>>, vector<1x1x128xf32>
    %36 = vector.shape_cast %35 : vector<1x1x128xf32> to vector<1x128xf32>
    %37 = vector.broadcast %36 : vector<1x128xf32> to vector<8x128xf32>
    %38 = arith.mulf %34, %37 : vector<8x128xf32>
    %c1_26 = arith.constant 1 : index
    %c0_27 = arith.constant 0 : index
    %c0_28 = arith.constant 0 : index
    %39 = vector.load %arg4[%c1_26, %c0_27, %c0_28] : memref<3x1x128xf32, #tpu.memory_space<vmem>>, vector<1x1x128xf32>
    %40 = vector.shape_cast %39 : vector<1x1x128xf32> to vector<1x128xf32>
    %41 = vector.broadcast %40 : vector<1x128xf32> to vector<8x128xf32>
    %42 = arith.addf %38, %41 : vector<8x128xf32>
    %c2 = arith.constant 2 : index
    %c0_29 = arith.constant 0 : index
    %c0_30 = arith.constant 0 : index
    %43 = vector.load %arg1[%c2, %c0_29, %c0_30] : memref<3x128x128xf32, #tpu.memory_space<vmem>>, vector<1x128x128xf32>
    %44 = vector.shape_cast %43 : vector<1x128x128xf32> to vector<128x128xf32>
    %cst_31 = arith.constant dense<0.000000e+00> : vector<8x128xf32>
    %45 = tpu.matmul %42, %44, %cst_31 {dimension_numbers = #tpu.dot_dimension_numbers<[1], [0], [0], [1], [0, 0, 1, 1], [], []>} : vector<8x128xf32>, vector<128x128xf32>, vector<8x128xf32> -> vector<8x128xf32>
    %c2_32 = arith.constant 2 : index
    %c0_33 = arith.constant 0 : index
    %c0_34 = arith.constant 0 : index
    %46 = vector.load %arg2[%c2_32, %c0_33, %c0_34] : memref<3x1x128xf32, #tpu.memory_space<vmem>>, vector<1x1x128xf32>
    %47 = vector.shape_cast %46 : vector<1x1x128xf32> to vector<1x128xf32>
    %48 = vector.broadcast %47 : vector<1x128xf32> to vector<8x128xf32>
    %49 = arith.addf %45, %48 : vector<8x128xf32>
    %cst_35 = arith.constant 0.000000e+00 : f32
    %50 = vector.broadcast %cst_35 : f32 to vector<8x128xf32>
    %51 = arith.cmpf ogt, %49, %50 : vector<8x128xf32>
    %52 = math.exp %49 : vector<8x128xf32>
    %cst_36 = arith.constant 1.000000e+00 : f32
    %53 = vector.broadcast %cst_36 : f32 to vector<8x128xf32>
    %54 = arith.subf %52, %53 : vector<8x128xf32>
    %55 = arith.select %51, %49, %54 : vector<8x128xi1>, vector<8x128xf32>
    %c2_37 = arith.constant 2 : index
    %c0_38 = arith.constant 0 : index
    %c0_39 = arith.constant 0 : index
    %56 = vector.load %arg3[%c2_37, %c0_38, %c0_39] : memref<3x1x128xf32, #tpu.memory_space<vmem>>, vector<1x1x128xf32>
    %57 = vector.shape_cast %56 : vector<1x1x128xf32> to vector<1x128xf32>
    %58 = vector.broadcast %57 : vector<1x128xf32> to vector<8x128xf32>
    %59 = arith.mulf %55, %58 : vector<8x128xf32>
    %c2_40 = arith.constant 2 : index
    %c0_41 = arith.constant 0 : index
    %c0_42 = arith.constant 0 : index
    %60 = vector.load %arg4[%c2_40, %c0_41, %c0_42] : memref<3x1x128xf32, #tpu.memory_space<vmem>>, vector<1x1x128xf32>
    %61 = vector.shape_cast %60 : vector<1x1x128xf32> to vector<1x128xf32>
    %62 = vector.broadcast %61 : vector<1x128xf32> to vector<8x128xf32>
    %63 = arith.addf %59, %62 : vector<8x128xf32>
    %c0_43 = arith.constant 0 : index
    %c0_44 = arith.constant 0 : index
    %64 = vector.load %arg5[%c0_43, %c0_44] : memref<128x128xf32, #tpu.memory_space<vmem>>, vector<128x128xf32>
    %cst_45 = arith.constant dense<0.000000e+00> : vector<8x128xf32>
    %65 = tpu.matmul %63, %64, %cst_45 {dimension_numbers = #tpu.dot_dimension_numbers<[1], [0], [0], [1], [0, 0, 1, 1], [], []>} : vector<8x128xf32>, vector<128x128xf32>, vector<8x128xf32> -> vector<8x128xf32>
    %c0_46 = arith.constant 0 : index
    %c0_47 = arith.constant 0 : index
    %66 = vector.load %arg6[%c0_46, %c0_47] : memref<1x128xf32, #tpu.memory_space<vmem>>, vector<1x128xf32>
    %67 = vector.broadcast %66 : vector<1x128xf32> to vector<8x128xf32>
    %68 = arith.addf %65, %67 : vector<8x128xf32>
    %c0_48 = arith.constant 0 : index
    %c0_49 = arith.constant 0 : index
    %69 = vector.load %arg7[%c0_48, %c0_49] : memref<8x128xf32, #tpu.memory_space<vmem>>, vector<8x128xf32>
    tpu.vector_store %arg7[%c0_48, %c0_49], %68 {strides = array<i32>} : memref<8x128xf32, #tpu.memory_space<vmem>>, vector<8x128xf32>,
    return
  }
}

</mosaic_0001>

<bundles_post_ra>
// kernel: mlp_forward.1
= control target key start
LH: loop header
LB: loop body
LE: loop exit
PB: predicated region body
PF: predicated region fallthrough
CT: control target
= control target key end

     0   :  { %12 = vsyncpa [#allocation3], 0  ;;  %s1082_s0 = inlined_call_operand.vmem [shape: f32[8,128], index: 0, kind: input, shape index: {}]   ;;  %s1083_s1 = inlined_call_operand.hbm [shape: f32[3,128,128], index: 1, kind: input, shape index: {}]   ;;  %s1084_s2 = inlined_call_operand.vmem [shape: f32[3,1,128], index: 2, kind: input, shape index: {}]   ;;  %s1085_s3 = inlined_call_operand.vmem [shape: f32[3,1,128], index: 3, kind: input, shape index: {}]   ;;  %s1086_s4 = inlined_call_operand.vmem [shape: f32[3,1,128], index: 4, kind: input, shape index: {}]   ;;  %s1087_s5 = inlined_call_operand.hbm [shape: f32[128,128], index: 5, kind: input, shape index: {}]   ;;  %s1088_s6 = inlined_call_operand.vmem [shape: f32[1,128], index: 6, kind: input, shape index: {}]   ;;  %s1089_s7 = inlined_call_operand.hbm [shape: f32[8,128], index: 7, kind: output, shape index: {}]  }
   0x1   :  { %13 = vsyncpa [#allocation6], 0 }
   0x2   :  { %14 = vsyncpa [#allocation4], 0  ;;  %s925_s24 = smov [#allocation2]   ;;  %s853_s28 = scalar_lea.hbm %s1083_s1, 6144 }
   0x3   :  { %s22_s25 = sshll.u32 %s925_s24, 4  ;;  %p854_p0 = scmp.ne.s32.totalorder %s1083_s1, %s853_s28  ;;  %s23_s25 = int_to_ptr.vmem [resolvable:$true] %s22_s25 }
   0x4   :  { %p857_p1 = scmp.lt.u32.totalorder %s853_s28, %s1083_s1 }
   0x6   :  { %p859_p2 = pnand %p857_p1, %p854_p0 }
   0x8   :  { %862 = shalt.err (!%p859_p2)
}
   0x9   :  { %s863_s10 = scalar_lea.vmem %s23_s25, 6144  ;;  %p868_p4 = scmp.lt.s32.totalorder %s23_s25, %s23_s25 }
   0xa   :  { %p864_p3 = scmp.ne.s32.totalorder %s23_s25, %s863_s10  ;;  %p869_p5 = scmp.lt.s32.totalorder %s863_s10, %s863_s10 }
   0xc   :  { %p870_p6 = por %p869_p5, %p868_p4 }
   0xe   :  { %p871_p7 = pnand %p870_p6, %p864_p3 }
  0x10   :  { %874 = shalt.err (!%p871_p7)
}
  0x11   :  { %s926_s11 = smov 128   ;;  %s927_s12 = smov 8  }
  0x12   :  { %28 = dma.hbm_to_vmem [thread:$0]  %s1083_s1, 6144, %s23_s25, [#allocation3], %s926_s11, %s926_s11, %s927_s12  }
  0x13   :  { %s928_s15 = smov [#allocation5]   ;;  %s875_s19 = scalar_lea.hbm %s1087_s5, 2048 }
  0x14   :  { %s40_s16 = sshll.u32 %s928_s15, 4  ;;  %p876_p8 = scmp.ne.s32.totalorder %s1087_s5, %s875_s19  ;;  %s41_s16 = int_to_ptr.vmem [resolvable:$true] %s40_s16 }
  0x15   :  { %p879_p9 = scmp.lt.u32.totalorder %s875_s19, %s1087_s5 }
  0x17   :  { %p881_p10 = pnand %p879_p9, %p876_p8 }
  0x19   :  { %884 = shalt.err (!%p881_p10)
}
  0x1a   :  { %s885_s24 = scalar_lea.vmem %s41_s16, 2048  ;;  %p890_p12 = scmp.lt.s32.totalorder %s41_s16, %s41_s16 }
  0x1b   :  { %p886_p11 = scmp.ne.s32.totalorder %s41_s16, %s885_s24  ;;  %p891_p13 = scmp.lt.s32.totalorder %s885_s24, %s885_s24 }
  0x1d   :  { %p892_p0 = por %p891_p13, %p890_p12 }
  0x1f   :  { %p893_p1 = pnand %p892_p0, %p886_p11 }
  0x21   :  { %896 = shalt.err (!%p893_p1)
}
  0x22   :  { %46 = dma.hbm_to_vmem [thread:$0]  %s1087_s5, 2048, %s41_s16, [#allocation6], %s926_s11, %s926_s11, %s927_s12  }
  0x23   :  { %919 = dma.done.wait [#allocation3], 6144  }
  0x24   :  { %920 = vsyncadd [#allocation3], 4294961152 }
  0x25   :  { %921 = dma.done.wait [#allocation6], 2048  }
  0x26   :  { %922 = vsyncadd [#allocation6], 4294965248  ;;  %v929_v0 = vmov 0.0|0.0   ;;  %vm930_vm0 = vmmov 0   ;;  %v931_v1 = vmov 0.0   ;;  %v56_v2 = vld [vmem:[#allocation2] sm:$0xff] }
  0x27   :  { %743 = vmatprep.subr.bf16.mxu0 %v929_v0  ;;  %635 = vmatprep.mubr.msk.f32.mxu0 %vm930_vm0, %v931_v1  ;;  %v57_v3 = vld [vmem:[#allocation2 + $0x8] sm:$0xff]  ;;  %v58_v4 = vld [vmem:[#allocation2 + $0x10] sm:$0xff]  ;;  %v59_v6 = vld [vmem:[#allocation2 + $0x18] sm:$0xff]  ;;  %s932_s22 = smov [#allocation7]  }
  0x28   :  { %767 = vmatprep.subr.bf16.mxu1 %v929_v0  ;;  %670 = vmatprep.mubr.msk.f32.mxu1 %vm930_vm0, %v931_v1  ;;  %v744_v5 = vpack.c.bf16 %v57_v3, %v56_v2  ;;  %v747_v7 = vpack.c.bf16 %v59_v6, %v58_v4  ;;  %v60_v8 = vld [vmem:[#allocation2 + $0x20] sm:$0xff]  ;;  %v61_v9 = vld [vmem:[#allocation2 + $0x28] sm:$0xff]  ;;  %v173_v12 = vld [vmem:[#allocation2 + $0x90] sm:$0xff]  ;;  %s506_s23 = sshll.u32 %s932_s22, 4  ;;  %s507_s23 = int_to_ptr.vmem [resolvable:$true] %s506_s23 }
  0x29   :  { %v171_v10 = vld [vmem:[#allocation2 + $0x80] sm:$0xff]  ;;  %v172_v11 = vld [vmem:[#allocation2 + $0x88] sm:$0xff]  ;;  %v174_v13 = vld [vmem:[#allocation2 + $0x98] sm:$0xff]  ;;  %v750_v14 = vpack.c.bf16 %v61_v9, %v60_v8  ;;  %p902_p3 = scmp.lt.s32.totalorder %s507_s23, %s507_s23 }
  0x2a   :  { %745 = vmatpush3.bf16.msra.mxu0 %v744_v5  ;;  %v768_v15 = vpack.c.bf16 %v172_v11, %v171_v10  ;;  %v62_v16 = vld [vmem:[#allocation2 + $0x30] sm:$0xff]  ;;  %v63_v17 = vld [vmem:[#allocation2 + $0x38] sm:$0xff]  ;;  %v771_v18 = vpack.c.bf16 %v174_v13, %v173_v12  ;;  %v64_v20 = vld [vmem:[#allocation2 + $0x40] sm:$0xff] }
  0x2b   :  { %746 = vmatprep.subr.bf16.mxu0 %v929_v0  ;;  %v753_v19 = vpack.c.bf16 %v63_v17, %v62_v16  ;;  %v65_v21 = vld [vmem:[#allocation2 + $0x48] sm:$0xff]  ;;  %v66_v23 = vld [vmem:[#allocation2 + $0x50] sm:$0xff]  ;;  %v67_v24 = vld [vmem:[#allocation2 + $0x58] sm:$0xff] }
  0x2c   :  { %769 = vmatpush3.bf16.msra.mxu1 %v768_v15  ;;  %v756_v22 = vpack.c.bf16 %v65_v21, %v64_v20  ;;  %v759_v25 = vpack.c.bf16 %v67_v24, %v66_v23  ;;  %v68_v26 = vld [vmem:[#allocation2 + $0x60] sm:$0xff]  ;;  %v69_v27 = vld [vmem:[#allocation2 + $0x68] sm:$0xff]  ;;  %v70_v29 = vld [vmem:[#allocation2 + $0x70] sm:$0xff] }
  0x2d   :  { %770 = vmatprep.subr.bf16.mxu1 %v929_v0  ;;  %v762_v28 = vpack.c.bf16 %v69_v27, %v68_v26  ;;  %v71_v30 = vld [vmem:[#allocation2 + $0x78] sm:$0xff]  ;;  %v55_v32 = vld [vmem:[%s1082_s0] sm:$0xff]  ;;  %v176_v34 = vld [vmem:[#allocation2 + $0xa8] sm:$0xff] }
  0x2e   :  { %748 = vmatpush3.bf16.msra.mxu0 %v747_v7  ;;  %v765_v31 = vpack.c.bf16 %v71_v30, %v70_v29  ;;  %v175_v33 = vld [vmem:[#allocation2 + $0xa0] sm:$0xff]  ;;  %v177_v36 = vld [vmem:[#allocation2 + $0xb0] sm:$0xff]  ;;  %v178_v37 = vld [vmem:[#allocation2 + $0xb8] sm:$0xff] }
  0x2f   :  { %749 = vmatprep.subr.bf16.mxu0 %v929_v0  ;;  %v774_v35 = vpack.c.bf16 %v176_v34, %v175_v33  ;;  %v777_v38 = vpack.c.bf16 %v178_v37, %v177_v36  ;;  %v179_v39 = vld [vmem:[#allocation2 + $0xc0] sm:$0xff]  ;;  %v180_v40 = vld [vmem:[#allocation2 + $0xc8] sm:$0xff]  ;;  %v181_v42 = vld [vmem:[#allocation2 + $0xd0] sm:$0xff] }
  0x30   :  { %772 = vmatpush3.bf16.msra.mxu1 %v771_v18  ;;  %v780_v41 = vpack.c.bf16 %v180_v40, %v179_v39  ;;  %v182_v43 = vld [vmem:[#allocation2 + $0xd8] sm:$0xff]  ;;  %v183_v45 = vld [vmem:[#allocation2 + $0xe0] sm:$0xff]  ;;  %v184_v46 = vld [vmem:[#allocation2 + $0xe8] sm:$0xff] }
  0x31   :  { %773 = vmatprep.subr.bf16.mxu1 %v929_v0  ;;  %v783_v44 = vpack.c.bf16 %v182_v43, %v181_v42  ;;  %v786_v47 = vpack.c.bf16 %v184_v46, %v183_v45  ;;  %v185_v48 = vld [vmem:[#allocation2 + $0xf0] sm:$0xff]  ;;  %v186_v49 = vld [vmem:[#allocation2 + $0xf8] sm:$0xff]  ;;  %v289_v51 = vld [vmem:[#allocation2 + $0x100] sm:$0xff] }
  0x32   :  { %751 = vmatpush3.bf16.msra.mxu0 %v750_v14  ;;  %v789_v50 = vpack.c.bf16 %v186_v49, %v185_v48  ;;  %v290_v52 = vld [vmem:[#allocation2 + $0x108] sm:$0xff]  ;;  %v291_v53 = vld [vmem:[#allocation2 + $0x110] sm:$0xff]  ;;  %v292_v55 = vld [vmem:[#allocation2 + $0x118] sm:$0xff] }
  0x33   :  { %752 = vmatprep.subr.bf16.mxu0 %v929_v0  ;;  %v792_v54 = vpack.c.bf16 %v290_v52, %v289_v51  ;;  %v795_v56 = vpack.c.bf16 %v292_v55, %v291_v53  ;;  %v516_v57 = vld [vmem:[%s1084_s2] ss:$0 sm:$0xff]  ;;  %v294_v8 = vld [vmem:[#allocation2 + $0x128] sm:$0xff]  ;;  %v295_v10 = vld [vmem:[#allocation2 + $0x130] sm:$0xff] }
  0x34   :  { %775 = vmatpush3.bf16.msra.mxu1 %v774_v35  ;;  %v518_v2 = vld [vmem:[%s1085_s3] ss:$0 sm:$0xff]  ;;  %v296_v11 = vld [vmem:[#allocation2 + $0x138] sm:$0xff]  ;;  %v298_v14 = vld [vmem:[#allocation2 + $0x148] sm:$0xff] }
  0x35   :  { %776 = vmatprep.subr.bf16.mxu1 %v929_v0  ;;  %v519_v4 = vld [vmem:[%s1086_s4] ss:$0 sm:$0xff]  ;;  %v801_v12 = vpack.c.bf16 %v296_v11, %v295_v10  ;;  %v299_v16 = vld [vmem:[#allocation2 + $0x150] sm:$0xff]  ;;  %v521_v30 = vld [vmem:[%s1084_s2 + $0x1] ss:$0 sm:$0xff] }
  0x36   :  { %754 = vmatpush3.bf16.msra.mxu0 %v753_v19  ;;  %v293_v7 = vld [vmem:[#allocation2 + $0x120] sm:$0xff]  ;;  %v302_v19 = vld [vmem:[#allocation2 + $0x168] sm:$0xff]  ;;  %v303_v21 = vld [vmem:[#allocation2 + $0x170] sm:$0xff] }
  0x37   :  { %755 = vmatprep.subr.bf16.mxu0 %v929_v0  ;;  %v798_v9 = vpack.c.bf16 %v294_v8, %v293_v7  ;;  %v297_v13 = vld [vmem:[#allocation2 + $0x140] sm:$0xff]  ;;  %v408_v26 = vld [vmem:[#allocation5 + $0x10] sm:$0xff]  ;;  %v411_v43 = vld [vmem:[#allocation5 + $0x28] sm:$0xff] }
  0x38   :  { %778 = vmatpush3.bf16.msra.mxu1 %v777_v38  ;;  %v804_v15 = vpack.c.bf16 %v298_v14, %v297_v13  ;;  %v301_v18 = vld [vmem:[#allocation2 + $0x160] sm:$0xff]  ;;  %v412_v45 = vld [vmem:[#allocation5 + $0x30] sm:$0xff]  ;;  %v413_v46 = vld [vmem:[#allocation5 + $0x38] sm:$0xff] }
  0x39   :  { %779 = vmatprep.subr.bf16.mxu1 %v929_v0  ;;  %v810_v20 = vpack.c.bf16 %v302_v19, %v301_v18  ;;  %v406_v24 = vld [vmem:[#allocation5] sm:$0xff]  ;;  %v415_v49 = vld [vmem:[#allocation5 + $0x48] sm:$0xff]  ;;  %v416_v51 = vld [vmem:[#allocation5 + $0x50] sm:$0xff] }
  0x3a   :  { %757 = vmatpush3.bf16.msra.mxu0 %v756_v22  ;;  %v304_v22 = vld [vmem:[#allocation2 + $0x178] sm:$0xff]  ;;  %v524_v37 = vld [vmem:[%s1085_s3 + $0x1] ss:$0 sm:$0xff]  ;;  %v419_v55 = vld [vmem:[#allocation5 + $0x68] sm:$0xff] }
  0x3b   :  { %758 = vmatprep.subr.bf16.mxu0 %v929_v0  ;;  %v813_v23 = vpack.c.bf16 %v304_v22, %v303_v21  ;;  %v526_v39 = vld [vmem:[%s1086_s4 + $0x1] ss:$0 sm:$0xff]  ;;  %v417_v52 = vld [vmem:[#allocation5 + $0x58] sm:$0xff] }
  0x3c   :  { %781 = vmatpush3.bf16.msra.mxu1 %v780_v41  ;;  %v410_v42 = vld [vmem:[#allocation5 + $0x20] sm:$0xff]  ;;  %v831_v53 = vpack.c.bf16 %v417_v52, %v416_v51 }
  0x3d   :  { %782 = vmatprep.subr.bf16.mxu1 %v929_v0  ;;  %v414_v48 = vld [vmem:[#allocation5 + $0x40] sm:$0xff] }
  0x3e   :  { %760 = vmatpush3.bf16.msra.mxu0 %v759_v25  ;;  %v407_v25 = vld [vmem:[#allocation5 + $0x8] sm:$0xff] }
  0x3f   :  { %761 = vmatprep.subr.bf16.mxu0 %v929_v0  ;;  %v816_v27 = vpack.c.bf16 %v407_v25, %v406_v24 }
  0x40   :  { %784 = vmatpush3.bf16.msra.mxu1 %v783_v44  ;;  %v822_v44 = vpack.c.bf16 %v411_v43, %v410_v42 }
  0x41   :  { %785 = vmatprep.subr.bf16.mxu1 %v929_v0 }
  0x42   :  { %763 = vmatpush3.bf16.msra.mxu0 %v762_v28  ;;  %v409_v28 = vld [vmem:[#allocation5 + $0x18] sm:$0xff] }
  0x43   :  { %764 = vmatprep.subr.bf16.mxu0 %v929_v0  ;;  %v819_v29 = vpack.c.bf16 %v409_v28, %v408_v26 }
  0x44   :  { %787 = vmatpush3.bf16.msra.mxu1 %v786_v47  ;;  %v825_v47 = vpack.c.bf16 %v413_v46, %v412_v45 }
  0x45   :  { %788 = vmatprep.subr.bf16.mxu1 %v929_v0 }
  0x46   :  { %766 = vmatpush3.bf16.msra.mxu0 %v765_v31 }
  0x47   :  { %791 = vmatprep.subr.bf16.mxu0 %v929_v0 }
  0x48   :  { %790 = vmatpush3.bf16.msra.mxu1 %v789_v50  ;;  %v828_v50 = vpack.c.bf16 %v415_v49, %v414_v48 }
  0x49   :  { %636 = vmatmul.mubr.f32.vlgmr.msra.gmra.mrb[0].mxu0 %v55_v32  ;;  %815 = vmatprep.subr.bf16.mxu1 %v929_v0 }
  0x4a   :  { %705 = vmatprep.mubr.msk.f32.mxu0 %vm930_vm0, %v931_v1  ;;  %793 = vmatpush3.bf16.msra.mxu0 %v792_v54  ;;  %v418_v54 = vld [vmem:[#allocation5 + $0x60] sm:$0xff] }
  0x4b   :  { %794 = vmatprep.subr.bf16.mxu0 %v929_v0 }
  0x4e   :  { %796 = vmatpush3.bf16.msra.mxu0 %v795_v56  ;;  %v834_v56 = vpack.c.bf16 %v419_v55, %v418_v54 }
  0x4f   :  { %797 = vmatprep.subr.bf16.mxu0 %v929_v0 }
  0x52   :  { %799 = vmatpush3.bf16.msra.mxu0 %v798_v9  ;;  %v534_v9 = vld [vmem:[%s1088_s6] ss:$0 sm:$0xff] }
  0x53   :  { %800 = vmatprep.subr.bf16.mxu0 %v929_v0 }
  0x56   :  { %802 = vmatpush3.bf16.msra.mxu0 %v801_v12 }
  0x57   :  { %803 = vmatprep.subr.bf16.mxu0 %v929_v0 }
  0x5a   :  { %805 = vmatpush3.bf16.msra.mxu0 %v804_v15 }
  0x5b   :  { %806 = vmatprep.subr.bf16.mxu0 %v929_v0 }
 0x11c   :  { %v145_v58 = vpop.f32.mrb[0].mxu0 }
 0x11d   :  { %v146_v59 = vadd.f32 %v516_v57, %v145_v58  ;;  %v637_v60 = vpop.f32.mrb[1].mxu0  ;;  %v420_v57 = vld [vmem:[#allocation5 + $0x70] sm:$0xff]  ;;  %v421_v58 = vld [vmem:[#allocation5 + $0x78] sm:$0xff] }
 0x11e   :  { %v528_v60 = vld [vmem:[%s1084_s2 + $0x2] ss:$0 sm:$0xff] }
 0x11f   :  { %v150_v61 = vmul.f32 1.442695, %v146_v59  ;;  %vm149_vm1 = vcmp.gt.f32.partialorder %v146_v59, 0.0 }
 0x121   :  { %847 = vpow2.f32 %v150_v61 }
 0x12b   :  { %v848_v62 = vpop.eup %847 }
 0x12c   :  { %v517_v63 = vadd.f32 -1.0, %v848_v62 }
 0x12e   :  { %v153_v3 = vsel %vm149_vm1, %v146_v59, %v517_v63  ;;  %v837_v59 = vpack.c.bf16 %v421_v58, %v420_v57 }
 0x12f   :  { %v161_v5 = vmul.f32 %v518_v2, %v153_v3 }
 0x131   :  { %v169_v6 = vadd.f32 %v519_v4, %v161_v5  ;;  %v531_v5 = vld [vmem:[%s1085_s3 + $0x2] ss:$0 sm:$0xff]  ;;  %s897_s3 = scalar_lea.vmem %s507_s23, 128 }
 0x132   :  { %p898_p2 = scmp.ne.s32.totalorder %s507_s23, %s897_s3  ;;  %p903_p4 = scmp.lt.s32.totalorder %s897_s3, %s897_s3 }
 0x133   :  { %671 = vmatmul.mubr.f32.vlgmr.msra.gmra.mrb[0].mxu1 %v169_v6  ;;  %v533_v6 = vld [vmem:[%s1086_s4 + $0x2] ss:$0 sm:$0xff] }
 0x134   :  { %740 = vmatprep.mubr.msk.f32.mxu1 %vm930_vm0, %v931_v1  ;;  %v300_v1 = vld [vmem:[#allocation2 + $0x158] sm:$0xff]  ;;  %817 = vmatpush3.bf16.msra.mxu1 %v816_v27  ;;  %p904_p5 = por %p903_p4, %p902_p3 }
 0x135   :  { %v807_v17 = vpack.c.bf16 %v300_v1, %v299_v16  ;;  %818 = vmatprep.subr.bf16.mxu1 %v929_v0 }
 0x136   :  { %p905_p6 = pnand %p904_p5, %p898_p2 }
 0x137   :  { %808 = vmatpush3.bf16.msra.mxu0 %v807_v17 }
 0x138   :  { %809 = vmatprep.subr.bf16.mxu0 %v929_v0  ;;  %820 = vmatpush3.bf16.msra.mxu1 %v819_v29 }
 0x139   :  { %821 = vmatprep.subr.bf16.mxu1 %v929_v0 }
 0x13b   :  { %811 = vmatpush3.bf16.msra.mxu0 %v810_v20 }
 0x13c   :  { %812 = vmatprep.subr.bf16.mxu0 %v929_v0  ;;  %823 = vmatpush3.bf16.msra.mxu1 %v822_v44 }
 0x13d   :  { %824 = vmatprep.subr.bf16.mxu1 %v929_v0 }
 0x13f   :  { %814 = vmatpush3.bf16.msra.mxu0 %v813_v23 }
 0x140   :  { %826 = vmatpush3.bf16.msra.mxu1 %v825_v47 }
 0x141   :  { %827 = vmatprep.subr.bf16.mxu1 %v929_v0 }
 0x144   :  { %829 = vmatpush3.bf16.msra.mxu1 %v828_v50 }
 0x145   :  { %830 = vmatprep.subr.bf16.mxu1 %v929_v0 }
 0x148   :  { %832 = vmatpush3.bf16.msra.mxu1 %v831_v53 }
 0x149   :  { %833 = vmatprep.subr.bf16.mxu1 %v929_v0 }
 0x14c   :  { %835 = vmatpush3.bf16.msra.mxu1 %v834_v56 }
 0x14d   :  { %836 = vmatprep.subr.bf16.mxu1 %v929_v0 }
 0x150   :  { %838 = vmatpush3.bf16.msra.mxu1 %v837_v59 }
 0x206   :  { %v261_v31 = vpop.f32.mrb[0].mxu1 }
 0x207   :  { %v262_v32 = vadd.f32 %v521_v30, %v261_v31  ;;  %v672_v33 = vpop.f32.mrb[1].mxu1 }
 0x209   :  { %v266_v34 = vmul.f32 1.442695, %v262_v32  ;;  %vm265_vm2 = vcmp.gt.f32.partialorder %v262_v32, 0.0 }
 0x20b   :  { %849 = vpow2.f32 %v266_v34 }
 0x215   :  { %v850_v35 = vpop.eup %849 }
 0x216   :  { %v522_v36 = vadd.f32 -1.0, %v850_v35 }
 0x218   :  { %v269_v38 = vsel %vm265_vm2, %v262_v32, %v522_v36 }
 0x219   :  { %v278_v40 = vmul.f32 %v524_v37, %v269_v38 }
 0x21b   :  { %v287_v41 = vadd.f32 %v526_v39, %v278_v40 }
 0x21d   :  { %706 = vmatmul.mubr.f32.vlgmr.msra.gmra.mrb[2].mxu0 %v287_v41 }
 0x2f0   :  { %v379_v61 = vpop.f32.mrb[2].mxu0 }
 0x2f1   :  { %v380_v62 = vadd.f32 %v528_v60, %v379_v61  ;;  %v707_v63 = vpop.f32.mrb[3].mxu0 }
 0x2f3   :  { %v384_v2 = vmul.f32 1.442695, %v380_v62  ;;  %vm383_vm3 = vcmp.gt.f32.partialorder %v380_v62, 0.0 }
 0x2f5   :  { %851 = vpow2.f32 %v384_v2 }
 0x2ff   :  { %v852_v3 = vpop.eup %851 }
 0x300   :  { %v529_v4 = vadd.f32 -1.0, %v852_v3 }
 0x302   :  { %v387_v0 = vsel %vm383_vm3, %v380_v62, %v529_v4 }
 0x303   :  { %v396_v7 = vmul.f32 %v531_v5, %v387_v0 }
 0x305   :  { %v405_v8 = vadd.f32 %v533_v6, %v396_v7 }
 0x307   :  { %741 = vmatmul.mubr.f32.vlgmr.msra.gmra.mrb[2].mxu1 %v405_v8 }
 0x3da   :  { %v495_v10 = vpop.f32.mrb[2].mxu1 }
 0x3db   :  { %v496_v11 = vadd.f32 %v534_v9, %v495_v10  ;;  %v742_v12 = vpop.f32.mrb[3].mxu1 }
 0x3dd   :  { %499 = vst [vmem:[#allocation7] sm:$0xff] %v496_v11 }
 0x3de   :  { %908 = shalt.err (!%p905_p6)
}
 0x3df   :  { %s909_s1 = scalar_lea.hbm %s1089_s7, 128 }
 0x3e0   :  { %p910_p7 = scmp.ne.s32.totalorder %s1089_s7, %s909_s1  ;;  %p913_p8 = scmp.lt.u32.totalorder %s909_s1, %s1089_s7 }
 0x3e2   :  { %p915_p9 = pnand %p913_p8, %p910_p7 }
 0x3e4   :  { %918 = shalt.err (!%p915_p9)
}
 0x3e5   :  { %509 = dma.vmem_to_hbm [thread:$0]  %s507_s23, 128, %s1089_s7, [#allocation4]  }
 0x3e6   :  { %923 = dma.done.wait [#allocation4], 128  }
 0x3e7   :  { %924 = vsyncadd [#allocation4], 4294967168 }
 0x3e8   :  { %513 = vsyncpa [#allocation3], 1 }
 0x3e9   :  { %514 = vsyncpa [#allocation6], 1 }
 0x3ea   :  { %515 = vsyncpa [#allocation4], 1 }

</bundles_post_ra>
